<compile_context>
chip_gen: v7x
topology: tpu7x:2x2x1
jax: 0.10.0
libtpu: 0.0.40
codegen_flags: <defaults>
</compile_context>

<pallas_src>
import functools

import numpy as np
import jax
import jax.numpy as jnp
from jax import lax
from jax.experimental import pallas as pl
from jax.experimental.pallas import tpu as pltpu


# -----------------------------------------------------------------------------
# Fused kernel: Coconut latent loop + transformer block + tied lm_head tile
# -----------------------------------------------------------------------------
def _coconut_fused_kernel(nlat_ref,                               # scalar prefetch (SMEM)
                          embeds_ref, bias_ref, latmask_ref,      # per-batch inputs (VMEM)
                          wq_ref, wk_ref, wv_ref, wo_ref,
                          w1_ref, w2_ref, emb_t_ref,              # bf16 weights (VMEM)
                          logits_ref,                             # output tile (VMEM)
                          x_ref, h_ref):                          # f32 scratch (VMEM)
    S, D = x_ref.shape
    inv_sqrt_d = 1.0 / (float(D) ** 0.5)
    j = pl.program_id(1)                                          # vocab-tile index

    def run_block():
        """One causal transformer block on x_ref; writes hidden states to h_ref."""
        x = x_ref[...]                                            # (S, D) f32
        xb = x.astype(jnp.bfloat16)
        # Separate Q/K/V GEMMs: avoids non-128-aligned lane slices when D % 128 != 0.
        q = jnp.dot(xb, wq_ref[...], preferred_element_type=jnp.float32)
        k = jnp.dot(xb, wk_ref[...], preferred_element_type=jnp.float32)
        v = jnp.dot(xb, wv_ref[...], preferred_element_type=jnp.float32)
        # scores = q @ k^T  (transpose absorbed by dot_general contracting dims).
        scores = lax.dot_general(q.astype(jnp.bfloat16), k.astype(jnp.bfloat16),
                                 (((1,), (1,)), ((), ())),
                                 preferred_element_type=jnp.float32)   # (S, S)
        scores = scores * inv_sqrt_d + bias_ref[0]                # additive causal/key mask
        scores = scores - jnp.max(scores, axis=-1, keepdims=True)
        p = jnp.exp(scores)
        p = p * pl.reciprocal(jnp.sum(p, axis=-1, keepdims=True), approx=True)  # EUP
        attn = jnp.dot(p.astype(jnp.bfloat16), v.astype(jnp.bfloat16),
                       preferred_element_type=jnp.float32)             # (S, D)
        h = x + jnp.dot(attn.astype(jnp.bfloat16), wo_ref[...],
                        preferred_element_type=jnp.float32)
        ff = jnp.dot(h.astype(jnp.bfloat16), w1_ref[...],
                     preferred_element_type=jnp.float32)
        ff = jnp.maximum(ff, 0.0)
        ff = jnp.dot(ff.astype(jnp.bfloat16), w2_ref[...],
                     preferred_element_type=jnp.float32)
        h_ref[...] = h + ff

    @pl.when(j == 0)
    def _():
        # Coconut latent loop: runs once per batch element (first vocab tile);
        # final hidden states persist in h_ref scratch across vocab tiles.
        x_ref[...] = embeds_ref[0]                                # resident inputs_embeds
        n_lat = nlat_ref[0]                                       # TOTAL latent count (ref loop count)

        def latent_pass(_, carry):
            run_block()
            # Vectorized latent overwrite: x[t] = h[t-1] at latent rows.
            # roll wraps t=0 -> S-1, matching PyTorch's hidden[b, -1] indexing.
            rolled = pltpu.roll(h_ref[...], shift=1, axis=0)      # XLU, off MXU path
            x_ref[...] = jnp.where(latmask_ref[0] > 0.5, rolled, x_ref[...])
            return carry

        lax.fori_loop(0, n_lat, latent_pass, 0)
        run_block()                                               # final base-model pass

    # Tied lm_head: one lane-dense vocab tile per grid step, streamed emb^T tile.
    logits_ref[0] = jnp.dot(h_ref[...].astype(jnp.bfloat16), emb_t_ref[...],
                            preferred_element_type=jnp.float32)


# -----------------------------------------------------------------------------
# Wrapper
# -----------------------------------------------------------------------------
def coconut_logits(input_ids, attention_mask, params, latent_token_id):
    B, S = input_ids.shape
    V, D = params["emb"].shape
    FF = params["w1"].shape[1]
    Vpad = ((V + 127) // 128) * 128

    # Vocab tile: largest multiple of 128 that divides Vpad (<= 1024).
    TILE_V = 128
    for t in (1024, 512, 256, 128):
        if Vpad % t == 0:
            TILE_V = t
            break
    n_vt = Vpad // TILE_V

    # ---- plain-JAX glue (fused by XLA under jit) ----------------------------
    inputs_embeds = jnp.take(params["emb"], input_ids, axis=0)        # (B, S, D) f32

    is_lat = input_ids == latent_token_id
    lat_mask = is_lat.astype(jnp.float32)[..., None]                  # (B, S, 1)
    n_lat = jnp.sum(is_lat).astype(jnp.int32).reshape(1)              # total latent count

    causal = jnp.tril(jnp.ones((S, S), dtype=bool))
    key_valid = attention_mask[:, None, :] > 0.5                      # (B, 1, S)
    bias = jnp.where(causal[None] & key_valid, 0.0, -1e9).astype(jnp.float32)  # (B, S, S)

    # bf16 MXU operands; accumulation stays f32 inside the kernel.
    bf = lambda a: a.astype(jnp.bfloat16)
    wq, wk, wv, wo = bf(params["wq"]), bf(params["wk"]), bf(params["wv"]), bf(params["wo"])
    w1, w2 = bf(params["w1"]), bf(params["w2"])
    # Tied lm_head weight: zero-pad vocab to a lane multiple, pre-transpose to (D, Vpad).
    emb_t = bf(jnp.pad(params["emb"], ((0, Vpad - V), (0, 0))).T)

    # Explicit VMEM budget (double-buffered blocks + f32 scratch) with headroom;
    # keeps the kernel inside v7x's 64 MiB physical VMEM.
    est = (2 * S * D * 4                                     # x / h scratch (f32)
           + 2 * (S * D * 4 + S * S * 4 + S * 4)             # per-batch inputs (x2 buf)
           + 2 * 2 * (4 * D * D + D * FF + FF * D)           # bf16 weights (x2 buf)
           + 2 * 2 * D * TILE_V                              # emb^T tile (x2 buf)
           + 2 * 4 * S * TILE_V)                             # logits tile (x2 buf)
    vmem_limit = int(min(64 * 1024 * 1024, max(8 * 1024 * 1024, 4 * est)))

    wspec = lambda shape: pl.BlockSpec(shape, lambda b, j, n: (0, 0))
    bspec = lambda shape: pl.BlockSpec(shape, lambda b, j, n: (b, 0, 0))

    logits = pl.pallas_call(
        _coconut_fused_kernel,
        out_shape=jax.ShapeDtypeStruct((B, S, Vpad), jnp.float32),
        grid_spec=pltpu.PrefetchScalarGridSpec(
            num_scalar_prefetch=1,
            grid=(B, n_vt),
            in_specs=[
                bspec((1, S, D)),                               # inputs_embeds
                bspec((1, S, S)),                               # additive attention bias
                bspec((1, S, 1)),                               # latent-row mask
                wspec((D, D)),                                  # wq
                wspec((D, D)),                                  # wk
                wspec((D, D)),                                  # wv
                wspec((D, D)),                                  # wo
                wspec((D, FF)),                                 # w1
                wspec((FF, D)),                                 # w2
                pl.BlockSpec((D, TILE_V), lambda b, j, n: (0, j)),   # emb^T vocab tile
            ],
            out_specs=pl.BlockSpec((1, S, TILE_V), lambda b, j, n: (b, 0, j)),
            scratch_shapes=[
                pltpu.VMEM((S, D), jnp.float32),                # resident inputs_embeds
                pltpu.VMEM((S, D), jnp.float32),                # hidden states (persist over vocab tiles)
            ],
        ),
        compiler_params=pltpu.CompilerParams(
            dimension_semantics=("parallel", "arbitrary"),       # batch -> both TCs on v7x
            vmem_limit_bytes=vmem_limit,
        ),
    )(n_lat, inputs_embeds, bias, lat_mask, wq, wk, wv, wo, w1, w2, emb_t)

    return logits[:, :, :V]


def causal_lm_loss(logits, labels):
    # HF-style shifted cross-entropy (no -100 entries in this synthetic input).
    shift_logits = logits[:, :-1, :]
    shift_labels = labels[:, 1:]
    logz = jax.nn.logsumexp(shift_logits, axis=-1)
    ll = jnp.take_along_axis(shift_logits, shift_labels[..., None], axis=-1)[..., 0]
    return jnp.mean(logz - ll)


@functools.partial(jax.jit, static_argnames=("latent_token_id",))
def minimal_coconut_forward(input_ids, attention_mask, params, labels,
                            latent_token_id):
    logits = coconut_logits(input_ids, attention_mask, params, latent_token_id)
    loss = causal_lm_loss(logits, labels)
    return loss, logits


# -----------------------------------------------------------------------------
# Deterministic parameter / input construction
# -----------------------------------------------------------------------------
def make_params(key, vocab, d_model, d_ff):
    ks = jax.random.split(key, 7)
    scale = 0.05
    return {
        "emb": jax.random.normal(ks[0], (vocab, d_model), jnp.float32) * 0.02,
        "wq": jax.random.normal(ks[1], (d_model, d_model), jnp.float32) * scale,
        "wk": jax.random.normal(ks[2], (d_model, d_model), jnp.float32) * scale,
        "wv": jax.random.normal(ks[3], (d_model, d_model), jnp.float32) * scale,
        "wo": jax.random.normal(ks[4], (d_model, d_model), jnp.float32) * scale,
        "w1": jax.random.normal(ks[5], (d_model, d_ff), jnp.float32) * scale,
        "w2": jax.random.normal(ks[6], (d_ff, d_model), jnp.float32) * scale,
    }


if __name__ == "__main__":
    B, S, D, FF, V = 2, 8, 32, 128, 64
    LATENT_ID, START_LATENT_ID, END_LATENT_ID = 61, 62, 63

    key = jax.random.PRNGKey(0)
    pkey, tkey = jax.random.split(key)
    params = make_params(pkey, V, D, FF)

    # deterministic input_ids with start/latent/end structure in each row
    base_tokens = jax.random.randint(tkey, (B, S), 1, V - 4, dtype=jnp.int32)
    input_ids = np.array(base_tokens)
    for b in range(B):
        input_ids[b, 2] = START_LATENT_ID
        input_ids[b, 3] = LATENT_ID
        input_ids[b, 4] = LATENT_ID
        input_ids[b, 5] = END_LATENT_ID
    input_ids = jnp.asarray(input_ids, dtype=jnp.int32)

    attention_mask = jnp.ones((B, S), dtype=jnp.float32)
    labels = input_ids  # supervise with the inputs themselves (synthetic)

    loss, logits = minimal_coconut_forward(
        input_ids, attention_mask, params, labels, latent_token_id=LATENT_ID)

    jax.block_until_ready(loss)
    jax.block_until_ready(logits)
    assert logits.shape == (B, S, V)
    assert bool(jnp.isfinite(loss))
    print("KERNEL_OK")
</pallas_src>

<mosaic_0001>
module attributes {stable_mosaic.version = 11 : i64} {
  func.func @_coconut_fused_kernel(%arg0: i32, %arg1: i32, %arg2: memref<1xi32, #tpu.memory_space<smem>>, %arg3: memref<1x8x32xf32, #tpu.memory_space<vmem>>, %arg4: memref<1x8x8xf32, #tpu.memory_space<vmem>>, %arg5: memref<1x8x1xf32, #tpu.memory_space<vmem>>, %arg6: memref<32x32xbf16, #tpu.memory_space<vmem>>, %arg7: memref<32x32xbf16, #tpu.memory_space<vmem>>, %arg8: memref<32x32xbf16, #tpu.memory_space<vmem>>, %arg9: memref<32x32xbf16, #tpu.memory_space<vmem>>, %arg10: memref<32x128xbf16, #tpu.memory_space<vmem>>, %arg11: memref<128x32xbf16, #tpu.memory_space<vmem>>, %arg12: memref<32x128xbf16, #tpu.memory_space<vmem>>, %arg13: memref<1x8x128xf32, #tpu.memory_space<vmem>>, %arg14: memref<8x32xf32, #tpu.memory_space<vmem>>, %arg15: memref<8x32xf32, #tpu.memory_space<vmem>>) attributes {dimension_semantics = [#tpu.dimension_semantics<parallel>, #tpu.dimension_semantics<arbitrary>], iteration_bounds = array<i64: 2, 1>, scalar_prefetch = 1 : i64, scratch_operands = 2 : i64, tpu.core_type = #tpu.core_type<tc>, window_params = [{transform_indices = @transform_0, window_bounds = array<i64: 1, 8, 32>}, {transform_indices = @transform_1, window_bounds = array<i64: 1, 8, 8>}, {transform_indices = @transform_2, window_bounds = array<i64: 1, 8, 1>}, {pipeline_mode = #tpu.pipeline_mode<synchronous>, transform_indices = @transform_3, window_bounds = array<i64: 32, 32>}, {pipeline_mode = #tpu.pipeline_mode<synchronous>, transform_indices = @transform_4, window_bounds = array<i64: 32, 32>}, {pipeline_mode = #tpu.pipeline_mode<synchronous>, transform_indices = @transform_5, window_bounds = array<i64: 32, 32>}, {pipeline_mode = #tpu.pipeline_mode<synchronous>, transform_indices = @transform_6, window_bounds = array<i64: 32, 32>}, {pipeline_mode = #tpu.pipeline_mode<synchronous>, transform_indices = @transform_7, window_bounds = array<i64: 32, 128>}, {pipeline_mode = #tpu.pipeline_mode<synchronous>, transform_indices = @transform_8, window_bounds = array<i64: 128, 32>}, {transform_indices = @transform_9, window_bounds = array<i64: 32, 128>}, {transform_indices = @transform_10, window_bounds = array<i64: 1, 8, 128>}]} {
    %c0_i32 = arith.constant 0 : i32
    %0 = arith.cmpi eq, %arg1, %c0_i32 : i32
    %1 = arith.extui %0 : i1 to i32
    %c0_i32_0 = arith.constant 0 : i32
    %2 = arith.cmpi ne, %1, %c0_i32_0 : i32
    scf.if %2 {
      %c0_7 = arith.constant 0 : index
      %c0_8 = arith.constant 0 : index
      %c0_9 = arith.constant 0 : index
      %10 = vector.load %arg3[%c0_7, %c0_8, %c0_9] : memref<1x8x32xf32, #tpu.memory_space<vmem>>, vector<1x8x32xf32>
      %11 = vector.shape_cast %10 : vector<1x8x32xf32> to vector<8x32xf32>
      %c0_10 = arith.constant 0 : index
      %c0_11 = arith.constant 0 : index
      %12 = vector.load %arg14[%c0_10, %c0_11] : memref<8x32xf32, #tpu.memory_space<vmem>>, vector<8x32xf32>
      tpu.vector_store %arg14[%c0_10, %c0_11], %11 {strides = array<i32>} : memref<8x32xf32, #tpu.memory_space<vmem>>, vector<8x32xf32>,
      %c0_12 = arith.constant 0 : index
      %13 = memref.load %arg2[%c0_12] : memref<1xi32, #tpu.memory_space<smem>>
      %c0_i32_13 = arith.constant 0 : i32
      %c0_i32_14 = arith.constant 0 : i32
      %14 = arith.subi %13, %c0_i32_14 : i32
      %15 = arith.addi %c0_i32_14, %14 : i32
      %c1_i32 = arith.constant 1 : i32
      scf.for %arg16 = %c0_i32_14 to %15 step %c1_i32  : i32 {
        %c0_46 = arith.constant 0 : index
        %c0_47 = arith.constant 0 : index
        %59 = vector.load %arg14[%c0_46, %c0_47] : memref<8x32xf32, #tpu.memory_space<vmem>>, vector<8x32xf32>
        %60 = arith.truncf %59 : vector<8x32xf32> to vector<8x32xbf16>
        %c0_48 = arith.constant 0 : index
        %c0_49 = arith.constant 0 : index
        %61 = vector.load %arg6[%c0_48, %c0_49] : memref<32x32xbf16, #tpu.memory_space<vmem>>, vector<32x32xbf16>
        %cst_50 = arith.constant dense<0.000000e+00> : vector<8x32xf32>
        %62 = tpu.matmul %60, %61, %cst_50 {dimension_numbers = #tpu.dot_dimension_numbers<[1], [0], [0], [1], [0, 0, 1, 1], [], []>} : vector<8x32xbf16>, vector<32x32xbf16>, vector<8x32xf32> -> vector<8x32xf32>
        %c0_51 = arith.constant 0 : index
        %c0_52 = arith.constant 0 : index
        %63 = vector.load %arg7[%c0_51, %c0_52] : memref<32x32xbf16, #tpu.memory_space<vmem>>, vector<32x32xbf16>
        %cst_53 = arith.constant dense<0.000000e+00> : vector<8x32xf32>
        %64 = tpu.matmul %60, %63, %cst_53 {dimension_numbers = #tpu.dot_dimension_numbers<[1], [0], [0], [1], [0, 0, 1, 1], [], []>} : vector<8x32xbf16>, vector<32x32xbf16>, vector<8x32xf32> -> vector<8x32xf32>
        %c0_54 = arith.constant 0 : index
        %c0_55 = arith.constant 0 : index
        %65 = vector.load %arg8[%c0_54, %c0_55] : memref<32x32xbf16, #tpu.memory_space<vmem>>, vector<32x32xbf16>
        %cst_56 = arith.constant dense<0.000000e+00> : vector<8x32xf32>
        %66 = tpu.matmul %60, %65, %cst_56 {dimension_numbers = #tpu.dot_dimension_numbers<[1], [0], [0], [1], [0, 0, 1, 1], [], []>} : vector<8x32xbf16>, vector<32x32xbf16>, vector<8x32xf32> -> vector<8x32xf32>
        %67 = arith.truncf %62 : vector<8x32xf32> to vector<8x32xbf16>
        %68 = arith.truncf %64 : vector<8x32xf32> to vector<8x32xbf16>
        %cst_57 = arith.constant dense<0.000000e+00> : vector<8x8xf32>
        %69 = tpu.matmul %67, %68, %cst_57 {dimension_numbers = #tpu.dot_dimension_numbers<[1], [1], [0], [0], [0, 0, 1, 0], [], []>} : vector<8x32xbf16>, vector<8x32xbf16>, vector<8x8xf32> -> vector<8x8xf32>
        %cst_58 = arith.constant 0.176776692 : f32
        %70 = vector.broadcast %cst_58 : f32 to vector<8x8xf32>
        %71 = arith.mulf %69, %70 : vector<8x8xf32>
        %c0_59 = arith.constant 0 : index
        %c0_60 = arith.constant 0 : index
        %c0_61 = arith.constant 0 : index
        %72 = vector.load %arg4[%c0_59, %c0_60, %c0_61] : memref<1x8x8xf32, #tpu.memory_space<vmem>>, vector<1x8x8xf32>
        %73 = vector.shape_cast %72 : vector<1x8x8xf32> to vector<8x8xf32>
        %74 = arith.addf %71, %73 : vector<8x8xf32>
        %cst_62 = arith.constant dense<0xFF800000> : vector<8xf32>
        %75 = vector.multi_reduction <maximumf>, %74, %cst_62 [1] : vector<8x8xf32> to vector<8xf32>
        %76 = vector.shape_cast %75 : vector<8xf32> to vector<8x1xf32>
        %77 = vector.broadcast %76 : vector<8x1xf32> to vector<8x8xf32>
        %78 = arith.subf %74, %77 : vector<8x8xf32>
        %79 = math.exp %78 : vector<8x8xf32>
        %cst_63 = arith.constant dense<0.000000e+00> : vector<8xf32>
        %80 = vector.multi_reduction <add>, %79, %cst_63 [1] : vector<8x8xf32> to vector<8xf32>
        %81 = vector.shape_cast %80 : vector<8xf32> to vector<8x1xf32>
        %82 = tpu.reciprocal %81 {approx = true} : vector<8x1xf32> -> vector<8x1xf32>
        %83 = vector.broadcast %82 : vector<8x1xf32> to vector<8x8xf32>
        %84 = arith.mulf %79, %83 : vector<8x8xf32>
        %85 = arith.truncf %84 : vector<8x8xf32> to vector<8x8xbf16>
        %86 = arith.truncf %66 : vector<8x32xf32> to vector<8x32xbf16>
        %cst_64 = arith.constant dense<0.000000e+00> : vector<8x32xf32>
        %87 = tpu.matmul %85, %86, %cst_64 {dimension_numbers = #tpu.dot_dimension_numbers<[1], [0], [0], [1], [0, 0, 1, 1], [], []>} : vector<8x8xbf16>, vector<8x32xbf16>, vector<8x32xf32> -> vector<8x32xf32>
        %88 = arith.truncf %87 : vector<8x32xf32> to vector<8x32xbf16>
        %c0_65 = arith.constant 0 : index
        %c0_66 = arith.constant 0 : index
        %89 = vector.load %arg9[%c0_65, %c0_66] : memref<32x32xbf16, #tpu.memory_space<vmem>>, vector<32x32xbf16>
        %cst_67 = arith.constant dense<0.000000e+00> : vector<8x32xf32>
        %90 = tpu.matmul %88, %89, %cst_67 {dimension_numbers = #tpu.dot_dimension_numbers<[1], [0], [0], [1], [0, 0, 1, 1], [], []>} : vector<8x32xbf16>, vector<32x32xbf16>, vector<8x32xf32> -> vector<8x32xf32>
        %91 = arith.addf %59, %90 : vector<8x32xf32>
        %92 = arith.truncf %91 : vector<8x32xf32> to vector<8x32xbf16>
        %c0_68 = arith.constant 0 : index
        %c0_69 = arith.constant 0 : index
        %93 = vector.load %arg10[%c0_68, %c0_69] : memref<32x128xbf16, #tpu.memory_space<vmem>>, vector<32x128xbf16>
        %cst_70 = arith.constant dense<0.000000e+00> : vector<8x128xf32>
        %94 = tpu.matmul %92, %93, %cst_70 {dimension_numbers = #tpu.dot_dimension_numbers<[1], [0], [0], [1], [0, 0, 1, 1], [], []>} : vector<8x32xbf16>, vector<32x128xbf16>, vector<8x128xf32> -> vector<8x128xf32>
        %cst_71 = arith.constant 0.000000e+00 : f32
        %95 = vector.broadcast %cst_71 : f32 to vector<8x128xf32>
        %96 = arith.maximumf %94, %95 : vector<8x128xf32>
        %97 = arith.truncf %96 : vector<8x128xf32> to vector<8x128xbf16>
        %c0_72 = arith.constant 0 : index
        %c0_73 = arith.constant 0 : index
        %98 = vector.load %arg11[%c0_72, %c0_73] : memref<128x32xbf16, #tpu.memory_space<vmem>>, vector<128x32xbf16>
        %cst_74 = arith.constant dense<0.000000e+00> : vector<8x32xf32>
        %99 = tpu.matmul %97, %98, %cst_74 {dimension_numbers = #tpu.dot_dimension_numbers<[1], [0], [0], [1], [0, 0, 1, 1], [], []>} : vector<8x128xbf16>, vector<128x32xbf16>, vector<8x32xf32> -> vector<8x32xf32>
        %100 = arith.addf %91, %99 : vector<8x32xf32>
        %c0_75 = arith.constant 0 : index
        %c0_76 = arith.constant 0 : index
        %101 = vector.load %arg15[%c0_75, %c0_76] : memref<8x32xf32, #tpu.memory_space<vmem>>, vector<8x32xf32>
        tpu.vector_store %arg15[%c0_75, %c0_76], %100 {strides = array<i32>} : memref<8x32xf32, #tpu.memory_space<vmem>>, vector<8x32xf32>,
        %c0_77 = arith.constant 0 : index
        %c0_78 = arith.constant 0 : index
        %102 = vector.load %arg15[%c0_77, %c0_78] : memref<8x32xf32, #tpu.memory_space<vmem>>, vector<8x32xf32>
        %c1_i32_79 = arith.constant 1 : i32
        %103 = tpu.dynamic_rotate %102 by %c1_i32_79 dim 0 : vector<8x32xf32>, i32 -> vector<8x32xf32>
        %c0_80 = arith.constant 0 : index
        %c0_81 = arith.constant 0 : index
        %c0_82 = arith.constant 0 : index
        %104 = vector.load %arg5[%c0_80, %c0_81, %c0_82] : memref<1x8x1xf32, #tpu.memory_space<vmem>>, vector<1x8x1xf32>
        %105 = vector.shape_cast %104 : vector<1x8x1xf32> to vector<8x1xf32>
        %cst_83 = arith.constant 5.000000e-01 : f32
        %106 = vector.broadcast %cst_83 : f32 to vector<8x1xf32>
        %107 = arith.cmpf ogt, %105, %106 : vector<8x1xf32>
        %c0_84 = arith.constant 0 : index
        %c0_85 = arith.constant 0 : index
        %108 = vector.load %arg14[%c0_84, %c0_85] : memref<8x32xf32, #tpu.memory_space<vmem>>, vector<8x32xf32>
        %109 = vector.shape_cast %107 : vector<8x1xi1> to vector<8x1xi1>
        %110 = vector.broadcast %109 : vector<8x1xi1> to vector<8x32xi1>
        %111 = arith.select %110, %103, %108 : vector<8x32xi1>, vector<8x32xf32>
        %c0_86 = arith.constant 0 : index
        %c0_87 = arith.constant 0 : index
        %112 = vector.load %arg14[%c0_86, %c0_87] : memref<8x32xf32, #tpu.memory_space<vmem>>, vector<8x32xf32>
        tpu.vector_store %arg14[%c0_86, %c0_87], %111 {strides = array<i32>} : memref<8x32xf32, #tpu.memory_space<vmem>>, vector<8x32xf32>,
      }
      %c0_15 = arith.constant 0 : index
      %c0_16 = arith.constant 0 : index
      %16 = vector.load %arg14[%c0_15, %c0_16] : memref<8x32xf32, #tpu.memory_space<vmem>>, vector<8x32xf32>
      %17 = arith.truncf %16 : vector<8x32xf32> to vector<8x32xbf16>
      %c0_17 = arith.constant 0 : index
      %c0_18 = arith.constant 0 : index
      %18 = vector.load %arg6[%c0_17, %c0_18] : memref<32x32xbf16, #tpu.memory_space<vmem>>, vector<32x32xbf16>
      %cst_19 = arith.constant dense<0.000000e+00> : vector<8x32xf32>
      %19 = tpu.matmul %17, %18, %cst_19 {dimension_numbers = #tpu.dot_dimension_numbers<[1], [0], [0], [1], [0, 0, 1, 1], [], []>} : vector<8x32xbf16>, vector<32x32xbf16>, vector<8x32xf32> -> vector<8x32xf32>
      %c0_20 = arith.constant 0 : index
      %c0_21 = arith.constant 0 : index
      %20 = vector.load %arg7[%c0_20, %c0_21] : memref<32x32xbf16, #tpu.memory_space<vmem>>, vector<32x32xbf16>
      %cst_22 = arith.constant dense<0.000000e+00> : vector<8x32xf32>
      %21 = tpu.matmul %17, %20, %cst_22 {dimension_numbers = #tpu.dot_dimension_numbers<[1], [0], [0], [1], [0, 0, 1, 1], [], []>} : vector<8x32xbf16>, vector<32x32xbf16>, vector<8x32xf32> -> vector<8x32xf32>
      %c0_23 = arith.constant 0 : index
      %c0_24 = arith.constant 0 : index
      %22 = vector.load %arg8[%c0_23, %c0_24] : memref<32x32xbf16, #tpu.memory_space<vmem>>, vector<32x32xbf16>
      %cst_25 = arith.constant dense<0.000000e+00> : vector<8x32xf32>
      %23 = tpu.matmul %17, %22, %cst_25 {dimension_numbers = #tpu.dot_dimension_numbers<[1], [0], [0], [1], [0, 0, 1, 1], [], []>} : vector<8x32xbf16>, vector<32x32xbf16>, vector<8x32xf32> -> vector<8x32xf32>
      %24 = arith.truncf %19 : vector<8x32xf32> to vector<8x32xbf16>
      %25 = arith.truncf %21 : vector<8x32xf32> to vector<8x32xbf16>
      %cst_26 = arith.constant dense<0.000000e+00> : vector<8x8xf32>
      %26 = tpu.matmul %24, %25, %cst_26 {dimension_numbers = #tpu.dot_dimension_numbers<[1], [1], [0], [0], [0, 0, 1, 0], [], []>} : vector<8x32xbf16>, vector<8x32xbf16>, vector<8x8xf32> -> vector<8x8xf32>
      %cst_27 = arith.constant 0.176776692 : f32
      %27 = vector.broadcast %cst_27 : f32 to vector<8x8xf32>
      %28 = arith.mulf %26, %27 : vector<8x8xf32>
      %c0_28 = arith.constant 0 : index
      %c0_29 = arith.constant 0 : index
      %c0_30 = arith.constant 0 : index
      %29 = vector.load %arg4[%c0_28, %c0_29, %c0_30] : memref<1x8x8xf32, #tpu.memory_space<vmem>>, vector<1x8x8xf32>
      %30 = vector.shape_cast %29 : vector<1x8x8xf32> to vector<8x8xf32>
      %31 = arith.addf %28, %30 : vector<8x8xf32>
      %cst_31 = arith.constant dense<0xFF800000> : vector<8xf32>
      %32 = vector.multi_reduction <maximumf>, %31, %cst_31 [1] : vector<8x8xf32> to vector<8xf32>
      %33 = vector.shape_cast %32 : vector<8xf32> to vector<8x1xf32>
      %34 = vector.broadcast %33 : vector<8x1xf32> to vector<8x8xf32>
      %35 = arith.subf %31, %34 : vector<8x8xf32>
      %36 = math.exp %35 : vector<8x8xf32>
      %cst_32 = arith.constant dense<0.000000e+00> : vector<8xf32>
      %37 = vector.multi_reduction <add>, %36, %cst_32 [1] : vector<8x8xf32> to vector<8xf32>
      %38 = vector.shape_cast %37 : vector<8xf32> to vector<8x1xf32>
      %39 = tpu.reciprocal %38 {approx = true} : vector<8x1xf32> -> vector<8x1xf32>
      %40 = vector.broadcast %39 : vector<8x1xf32> to vector<8x8xf32>
      %41 = arith.mulf %36, %40 : vector<8x8xf32>
      %42 = arith.truncf %41 : vector<8x8xf32> to vector<8x8xbf16>
      %43 = arith.truncf %23 : vector<8x32xf32> to vector<8x32xbf16>
      %cst_33 = arith.constant dense<0.000000e+00> : vector<8x32xf32>
      %44 = tpu.matmul %42, %43, %cst_33 {dimension_numbers = #tpu.dot_dimension_numbers<[1], [0], [0], [1], [0, 0, 1, 1], [], []>} : vector<8x8xbf16>, vector<8x32xbf16>, vector<8x32xf32> -> vector<8x32xf32>
      %45 = arith.truncf %44 : vector<8x32xf32> to vector<8x32xbf16>
      %c0_34 = arith.constant 0 : index
      %c0_35 = arith.constant 0 : index
      %46 = vector.load %arg9[%c0_34, %c0_35] : memref<32x32xbf16, #tpu.memory_space<vmem>>, vector<32x32xbf16>
      %cst_36 = arith.constant dense<0.000000e+00> : vector<8x32xf32>
      %47 = tpu.matmul %45, %46, %cst_36 {dimension_numbers = #tpu.dot_dimension_numbers<[1], [0], [0], [1], [0, 0, 1, 1], [], []>} : vector<8x32xbf16>, vector<32x32xbf16>, vector<8x32xf32> -> vector<8x32xf32>
      %48 = arith.addf %16, %47 : vector<8x32xf32>
      %49 = arith.truncf %48 : vector<8x32xf32> to vector<8x32xbf16>
      %c0_37 = arith.constant 0 : index
      %c0_38 = arith.constant 0 : index
      %50 = vector.load %arg10[%c0_37, %c0_38] : memref<32x128xbf16, #tpu.memory_space<vmem>>, vector<32x128xbf16>
      %cst_39 = arith.constant dense<0.000000e+00> : vector<8x128xf32>
      %51 = tpu.matmul %49, %50, %cst_39 {dimension_numbers = #tpu.dot_dimension_numbers<[1], [0], [0], [1], [0, 0, 1, 1], [], []>} : vector<8x32xbf16>, vector<32x128xbf16>, vector<8x128xf32> -> vector<8x128xf32>
      %cst_40 = arith.constant 0.000000e+00 : f32
      %52 = vector.broadcast %cst_40 : f32 to vector<8x128xf32>
      %53 = arith.maximumf %51, %52 : vector<8x128xf32>
      %54 = arith.truncf %53 : vector<8x128xf32> to vector<8x128xbf16>
      %c0_41 = arith.constant 0 : index
      %c0_42 = arith.constant 0 : index
      %55 = vector.load %arg11[%c0_41, %c0_42] : memref<128x32xbf16, #tpu.memory_space<vmem>>, vector<128x32xbf16>
      %cst_43 = arith.constant dense<0.000000e+00> : vector<8x32xf32>
      %56 = tpu.matmul %54, %55, %cst_43 {dimension_numbers = #tpu.dot_dimension_numbers<[1], [0], [0], [1], [0, 0, 1, 1], [], []>} : vector<8x128xbf16>, vector<128x32xbf16>, vector<8x32xf32> -> vector<8x32xf32>
      %57 = arith.addf %48, %56 : vector<8x32xf32>
      %c0_44 = arith.constant 0 : index
      %c0_45 = arith.constant 0 : index
      %58 = vector.load %arg15[%c0_44, %c0_45] : memref<8x32xf32, #tpu.memory_space<vmem>>, vector<8x32xf32>
      tpu.vector_store %arg15[%c0_44, %c0_45], %57 {strides = array<i32>} : memref<8x32xf32, #tpu.memory_space<vmem>>, vector<8x32xf32>,
    } else {
    }
    %c0 = arith.constant 0 : index
    %c0_1 = arith.constant 0 : index
    %3 = vector.load %arg15[%c0, %c0_1] : memref<8x32xf32, #tpu.memory_space<vmem>>, vector<8x32xf32>
    %4 = arith.truncf %3 : vector<8x32xf32> to vector<8x32xbf16>
    %c0_2 = arith.constant 0 : index
    %c0_3 = arith.constant 0 : index
    %5 = vector.load %arg12[%c0_2, %c0_3] : memref<32x128xbf16, #tpu.memory_space<vmem>>, vector<32x128xbf16>
    %cst = arith.constant dense<0.000000e+00> : vector<8x128xf32>
    %6 = tpu.matmul %4, %5, %cst {dimension_numbers = #tpu.dot_dimension_numbers<[1], [0], [0], [1], [0, 0, 1, 1], [], []>} : vector<8x32xbf16>, vector<32x128xbf16>, vector<8x128xf32> -> vector<8x128xf32>
    %c0_4 = arith.constant 0 : index
    %c0_5 = arith.constant 0 : index
    %c0_6 = arith.constant 0 : index
    %7 = vector.load %arg13[%c0_4, %c0_5, %c0_6] : memref<1x8x128xf32, #tpu.memory_space<vmem>>, vector<1x8x128xf32>
    %8 = vector.shape_cast %7 : vector<1x8x128xf32> to vector<8x128xf32>
    %9 = vector.shape_cast %6 : vector<8x128xf32> to vector<1x8x128xf32>
    tpu.vector_store %arg13[%c0_4, %c0_5, %c0_6], %9 {strides = array<i32>} : memref<1x8x128xf32, #tpu.memory_space<vmem>>, vector<1x8x128xf32>,
    return
  }
  func.func @transform_0(%arg0: i32, %arg1: i32, %arg2: memref<1xi32, #tpu.memory_space<smem>>) -> (i32, i32, i32) {
    %c0_i32 = arith.constant 0 : i32
    %c0_i32_0 = arith.constant 0 : i32
    %c0_i32_1 = arith.constant 0 : i32
    return %arg0, %c0_i32, %c0_i32_0 : i32, i32, i32
  }
  func.func @transform_1(%arg0: i32, %arg1: i32, %arg2: memref<1xi32, #tpu.memory_space<smem>>) -> (i32, i32, i32) {
    %c0_i32 = arith.constant 0 : i32
    %c0_i32_0 = arith.constant 0 : i32
    %c0_i32_1 = arith.constant 0 : i32
    return %arg0, %c0_i32, %c0_i32_0 : i32, i32, i32
  }
  func.func @transform_2(%arg0: i32, %arg1: i32, %arg2: memref<1xi32, #tpu.memory_space<smem>>) -> (i32, i32, i32) {
    %c0_i32 = arith.constant 0 : i32
    %c0_i32_0 = arith.constant 0 : i32
    %c0_i32_1 = arith.constant 0 : i32
    return %arg0, %c0_i32, %c0_i32_0 : i32, i32, i32
  }
  func.func @transform_3(%arg0: i32, %arg1: i32, %arg2: memref<1xi32, #tpu.memory_space<smem>>) -> (i32, i32) {
    %c0_i32 = arith.constant 0 : i32
    %c0_i32_0 = arith.constant 0 : i32
    %c0_i32_1 = arith.constant 0 : i32
    return %c0_i32, %c0_i32_0 : i32, i32
  }
  func.func @transform_4(%arg0: i32, %arg1: i32, %arg2: memref<1xi32, #tpu.memory_space<smem>>) -> (i32, i32) {
    %c0_i32 = arith.constant 0 : i32
    %c0_i32_0 = arith.constant 0 : i32
    %c0_i32_1 = arith.constant 0 : i32
    return %c0_i32, %c0_i32_0 : i32, i32
  }
  func.func @transform_5(%arg0: i32, %arg1: i32, %arg2: memref<1xi32, #tpu.memory_space<smem>>) -> (i32, i32) {
    %c0_i32 = arith.constant 0 : i32
    %c0_i32_0 = arith.constant 0 : i32
    %c0_i32_1 = arith.constant 0 : i32
    return %c0_i32, %c0_i32_0 : i32, i32
  }
  func.func @transform_6(%arg0: i32, %arg1: i32, %arg2: memref<1xi32, #tpu.memory_space<smem>>) -> (i32, i32) {
    %c0_i32 = arith.constant 0 : i32
    %c0_i32_0 = arith.constant 0 : i32
    %c0_i32_1 = arith.constant 0 : i32
    return %c0_i32, %c0_i32_0 : i32, i32
  }
  func.func @transform_7(%arg0: i32, %arg1: i32, %arg2: memref<1xi32, #tpu.memory_space<smem>>) -> (i32, i32) {
    %c0_i32 = arith.constant 0 : i32
    %c0_i32_0 = arith.constant 0 : i32
    %c0_i32_1 = arith.constant 0 : i32
    return %c0_i32, %c0_i32_0 : i32, i32
  }
  func.func @transform_8(%arg0: i32, %arg1: i32, %arg2: memref<1xi32, #tpu.memory_space<smem>>) -> (i32, i32) {
    %c0_i32 = arith.constant 0 : i32
    %c0_i32_0 = arith.constant 0 : i32
    %c0_i32_1 = arith.constant 0 : i32
    return %c0_i32, %c0_i32_0 : i32, i32
  }
  func.func @transform_9(%arg0: i32, %arg1: i32, %arg2: memref<1xi32, #tpu.memory_space<smem>>) -> (i32, i32) {
    %c0_i32 = arith.constant 0 : i32
    %c0_i32_0 = arith.constant 0 : i32
    return %c0_i32, %arg1 : i32, i32
  }
  func.func @transform_10(%arg0: i32, %arg1: i32, %arg2: memref<1xi32, #tpu.memory_space<smem>>) -> (i32, i32, i32) {
    %c0_i32 = arith.constant 0 : i32
    %c0_i32_0 = arith.constant 0 : i32
    return %arg0, %c0_i32, %arg1 : i32, i32, i32
  }
}

</mosaic_0001>

<bundles_post_ra>
// kernel: minimal_coconut_forward.1
= control target key start
LH: loop header
LB: loop body
LE: loop exit
PB: predicated region body
PF: predicated region fallthrough
CT: control target
= control target key end

     0   :  { %s2124_s19 = smov 0   ;;  %s2126_s20 = smov 0   ;;  %s2421_s0 = inlined_call_operand.<no memory space> [shape: s32[1], index: 0, kind: input, shape index: {}]   ;;  %s2422_s1 = inlined_call_operand.vmem [shape: f32[2,8,32], index: 1, kind: input, shape index: {}]   ;;  %s2423_s2 = inlined_call_operand.vmem [shape: f32[2,8,8], index: 2, kind: input, shape index: {}]   ;;  %s2424_s3 = inlined_call_operand.vmem [shape: f32[2,8,1], index: 3, kind: input, shape index: {}]   ;;  %s2425_s4 = inlined_call_operand.vmem [shape: bf16[32,32], index: 4, kind: input, shape index: {}]   ;;  %s2426_s5 = inlined_call_operand.vmem [shape: bf16[32,32], index: 5, kind: input, shape index: {}]   ;;  %s2427_s6 = inlined_call_operand.vmem [shape: bf16[32,32], index: 6, kind: input, shape index: {}]   ;;  %s2428_s7 = inlined_call_operand.vmem [shape: bf16[32,32], index: 7, kind: input, shape index: {}]   ;;  %s2429_s8 = inlined_call_operand.vmem [shape: bf16[32,128], index: 8, kind: input, shape index: {}]   ;;  %s2430_s9 = inlined_call_operand.vmem [shape: bf16[128,32], index: 9, kind: input, shape index: {}]   ;;  %s2431_s10 = inlined_call_operand.vmem [shape: bf16[32,128], index: 10, kind: input, shape index: {}]   ;;  %s2432_s11 = inlined_call_operand.vmem [shape: f32[2,8,128], index: 11, kind: output, shape index: {}]  }
   0x1   :  { %16 = sst [smem:[#allocation5]] %s2421_s0  ;;  %s2128_s21 = smov 0  }
   0x2 LB: > { %s34_s0 = sadd.s32 1, %s2046_s20  ;;  %p1667_p0 = scmp.ge.s32.totalorder %s2050_s21, 1  ;;  %s2050_s21 = sphi %s2128_s21, %s22_s21   ;;  %s2046_s20 = sphi %s2126_s20, %s2434_s20   ;;  %s2042_s19 = sphi %s2124_s19, %s2433_s19  }
   0x3   : > { %p36_p1 = scmp.ge.s32.totalorder %s34_s0, 2  ;;  %p354_p2 = scmp.lt.s32.totalorder %s2050_s21, 3 }
   0x5   : > { %s2436_s0 = smov (%p36_p1, %s34_s0), 0  ;;  %p355_p3 = pnand %p1667_p0, %p354_p2 }
   0x6   : > { %p405_p4 = scmp.lt.s32.totalorder (!%p355_p3), %s2042_s19, 1  ;;  %s2142_s22 = sld [smem:[#allocation5]] (!%p355_p3)  ;;  %vm434_vm0 = vcmask (!%p355_p3), 261120  }
   0x7   : > { %358 = sbr.rel (%p355_p3) target bundleno = 3520 (0xdc0), region = 60 }
   0xc   : > { %p1672_p5 = scmp.le.s32.totalorder (!%p355_p3), %s2142_s22, 0 }
   0xe   : > { %s2438_s19 = smov (!%p405_p4, %s2042_s19), 1  ;;  %1609 = sbr.rel (%p1672_p5) target bundleno = 1664 (0x680), region = 104 }
   0xf   : > { %s2144_s23 = sshll.u32 %s2438_s19, 3  ;;  %s2166_s17 = smov (!%p1672_p5), 0  }
  0x10   : > { %s408_s26 = scalar_lea.vmem %s2422_s1, %s2144_s23  ;;  %s2154_s29 = scalar_lea.vmem %s2423_s2, %s2144_s23 }
  0x11   : > { %s416_s13 = scalar_lea.vmem %s2424_s3, %s2144_s23  ;;  %s427_s16 = scalar_lea.vmem %s2432_s11, %s2144_s23  ;;  %v433_v0 = vld [vmem:[%s408_s26] sm:$0xff] }
  0x12   : > { %435 = vst.msk [vmem:[#allocation2] sm:$0xff] %vm434_vm0, %v433_v0 }
  0x15 LB: >> { %v1978_v1 = vld [vmem:[%s2425_s4] sm:$0xff]   ;;  %v2056_v2 = vmov 0.0   ;;  %v1979_v3 = vld [vmem:[%s2425_s4 + $0x8] sm:$0xff]   ;;  %vm2057_vm1 = vmmov 0   ;;  %vm667_vm2 = vcmask 64512   ;;  %vm684_vm3 = vcmask 1043456   ;;  %s2054_s17 = sphi %s2166_s17, %s440_s17  }
  0x16   : >> { %1787 = vmatprep.subr.bf16.mxu0 %v2056_v2  ;;  %1811 = vmatprep.subr.bf16.mxu1 %v2056_v2  ;;  %v1980_v5 = vld [vmem:[%s2426_s5] sm:$0xff]   ;;  %v1981_v7 = vld [vmem:[%s2426_s5 + $0x8] sm:$0xff]   ;;  %v1990_v55 = vld [vmem:[%s2430_s9 + $0x10] sm:$0xff]   ;;  %s440_s17 = sadd.s32 1, %s2054_s17  }
  0x17   : >> { %1788 = vmatpush3.bf16.msra.mxu0 %v1978_v1  ;;  %1791 = vmatprep.mubr.msk.bf16.mxu0 %vm2057_vm1, %v2056_v2  ;;  %v1982_v19 = vld [vmem:[%s2427_s6] sm:$0xff]   ;;  %v1983_v20 = vld [vmem:[%s2427_s6 + $0x8] sm:$0xff]   ;;  %v1991_v56 = vld [vmem:[%s2430_s9 + $0x18] sm:$0xff]   ;;  %p439_p6 = scmp.ge.s32.totalorder %s440_s17, %s2142_s22 }
  0x18   : >> { %1789 = vmatprep.subr.bf16.mxu0 %v2056_v2  ;;  %1813 = vmatprep.mubr.msk.bf16.mxu1 %vm2057_vm1, %v2056_v2  ;;  %v665_v22 = vld [vmem:[%s2154_s29] sm:$0xff]  ;;  %v1985_v45 = vld [vmem:[%s2428_s7 + $0x8] sm:$0xff]   ;;  %v1994_v59 = vld [vmem:[%s2430_s9 + $0x30] sm:$0xff]  }
  0x19   : >> { %v2181_v4 = vld [vmem:[#allocation2] sm:$0xff]  ;;  %v1987_v52 = vld [vmem:[%s2429_s8 + $0x8] sm:$0xff]  }
  0x1a   : >> { %v444_v6 = vpack.c.bf16 %v2181_v4, %v2181_v4  ;;  %v1984_v40 = vld [vmem:[%s2428_s7] sm:$0xff]   ;;  %v1989_v54 = vld [vmem:[%s2430_s9 + $0x8] sm:$0xff]  }
  0x1b   : >> { %1790 = vmatpush3.bf16.msra.mxu0 %v1979_v3  ;;  %v1986_v46 = vld [vmem:[%s2429_s8] sm:$0xff]   ;;  %v1993_v58 = vld [vmem:[%s2430_s9 + $0x28] sm:$0xff]   ;;  %v1995_v3 = vld [vmem:[%s2430_s9 + $0x38] sm:$0xff]  }
  0x1c   : >> { %1795 = vmatprep.subr.bf16.mxu0 %v2056_v2  ;;  %v1988_v53 = vld [vmem:[%s2430_s9] sm:$0xff]  }
  0x1d   : >> { %v1992_v57 = vld [vmem:[%s2430_s9 + $0x20] sm:$0xff]  }
  0x1e   : >> { %1792 = vmatmul.mubr.msk.bf16.vlgmr.msra.gmra.mrb[0].mxu0 %vm434_vm0, %v444_v6 }
  0x1f   : >> { %1796 = vmatpush3.bf16.msra.mxu0 %v1980_v5  ;;  %1799 = vmatprep.mubr.msk.bf16.mxu0 %vm2057_vm1, %v2056_v2  ;;  %v959_v5 = vld [vmem:[%s416_s13] sm:$0xff] }
  0x20   : >> { %1797 = vmatprep.subr.bf16.mxu0 %v2056_v2  ;;  %vm960_vm4 = vcmp.gt.f32.partialorder %v959_v5, 0.5 }
  0x23   : >> { %1798 = vmatpush3.bf16.msra.mxu0 %v1981_v7 }
  0x24   : >> { %1803 = vmatprep.subr.bf16.mxu0 %v2056_v2 }
  0x26   : >> { %1800 = vmatmul.mubr.msk.bf16.vlgmr.msra.gmra.mrb[4].mxu0 %vm434_vm0, %v444_v6 }
  0x27   : >> { %1807 = vmatprep.mubr.msk.bf16.mxu0 %vm2057_vm1, %v2056_v2  ;;  %1804 = vmatpush3.bf16.msra.mxu0 %v1982_v19 }
  0x28   : >> { %1805 = vmatprep.subr.bf16.mxu0 %v2056_v2 }
  0x2b   : >> { %1806 = vmatpush3.bf16.msra.mxu0 %v1983_v20 }
  0x2c   : >> { %1817 = vmatprep.subr.bf16.mxu0 %v2056_v2 }
  0x2e   : >> { %1808 = vmatmul.mubr.msk.bf16.vlgmr.msra.gmra.mrb[8].mxu0 %vm434_vm0, %v444_v6 }
  0x2f   : >> { %1819 = vmatprep.mubr.msk.bf16.mxu0 %vm2057_vm1, %v2056_v2 }
  0xf1   : >> { %v498_v8 = vpop.f32.mrb[0].mxu0 }
  0xf2   : >> { %v1793_v9 = vpop.f32.mrb[1].mxu0  ;;  %v616_v18 = vpack.c.bf16 %v498_v8, %v498_v8 }
  0xf3   : >> { %v501_v10 = vpop.f32.mrb[2].mxu0 }
  0xf4   : >> { %v1794_v11 = vpop.f32.mrb[3].mxu0 }
  0xf9   : >> { %v554_v12 = vpop.f32.mrb[4].mxu0 }
  0xfa   : >> { %v617_v13 = vpack.c.bf16 %v554_v12, %v554_v12  ;;  %v1801_v14 = vpop.f32.mrb[5].mxu0 }
  0xfb   : >> { %v557_v15 = vpop.f32.mrb[6].mxu0 }
  0xfc   : >> { %v1802_v16 = vpop.f32.mrb[7].mxu0  ;;  %v622_v17 = vsel %vm434_vm0, %v617_v13, 0 }
  0xfd   : >> { %1812 = vmatpush3.bf16.xpose.msra.mxu1 %v622_v17 }
  0xfe   : >> { %1823 = vmatprep.subr.bf16.mxu1 %v2056_v2 }
 0x101   : >> { %v610_v34 = vpop.f32.mrb[8].mxu0 }
 0x102   : >> { %v1809_v35 = vpop.f32.mrb[9].mxu0  ;;  %v680_v38 = vpack.c.bf16 %v610_v34, %v610_v34 }
 0x103   : >> { %v613_v36 = vpop.f32.mrb[10].mxu0 }
 0x104   : >> { %1814 = vmatmul.mubr.msk.bf16.vlgmr.msra.gmra.mrb[0].mxu1 %vm434_vm0, %v616_v18  ;;  %v1810_v37 = vpop.f32.mrb[11].mxu0  ;;  %v686_v39 = vsel %vm684_vm3, %v680_v38, 0 }
 0x105   : >> { %1827 = vmatprep.mubr.msk.bf16.mxu1 %vm2057_vm1, %v2056_v2  ;;  %1818 = vmatpush3.bf16.msra.mxu0 %v686_v39 }
 0x106   : >> { %1831 = vmatprep.subr.bf16.mxu0 %v2056_v2  ;;  %1824 = vmatpush3.bf16.msra.mxu1 %v1984_v40 }
 0x107   : >> { %1825 = vmatprep.subr.bf16.mxu1 %v2056_v2 }
 0x10a   : >> { %1826 = vmatpush3.bf16.msra.mxu1 %v1985_v45 }
 0x10b   : >> { %1839 = vmatprep.subr.bf16.mxu1 %v2056_v2 }
 0x1d7   : >> { %v658_v21 = vpop.f32.mrb[0].mxu1 }
 0x1d8   : >> { %v664_v23 = vmul.f32 0.17677669, %v658_v21  ;;  %v1815_v24 = vpop.f32.mrb[1].mxu1 }
 0x1d9   : >> { %v661_v25 = vpop.f32.mrb[2].mxu1 }
 0x1da   : >> { %v1816_v26 = vpop.f32.mrb[3].mxu1  ;;  %v666_v27 = vadd.f32 %v665_v22, %v664_v23 }
 0x1dc   : >> { %v668_v28 = vsel %vm667_vm2, %v666_v27, -inf }
 0x1dd   : >> { %669 = vmax.xlane.f32.xlu0 %v668_v28 }
 0x26a   : >> { %v670_v29 = vpop.xlane.xlu0 %669 }
 0x26b   : >> { %v671_v30 = vsub.f32 %v666_v27, %v670_v29 }
 0x26d   : >> { %v672_v31 = vmul.f32 1.442695, %v671_v30 }
 0x26f   : >> { %1996 = vpow2.f32 %v672_v31 }
 0x279   : >> { %v1997_v32 = vpop.eup %1996 }
 0x27a   : >> { %v674_v33 = vsel %vm667_vm2, %v1997_v32, 0.0 }
 0x27b   : >> { %675 = vadd.xlane.f32.xlu0 %v674_v33 }
 0x308   : >> { %v676_v41 = vpop.xlane.xlu0 %675 }
 0x309   : >> { %1998 = vrcp.f32 %v676_v41 }
 0x313   : >> { %v1999_v42 = vpop.eup %1998 }
 0x314   : >> { %v678_v43 = vmul.f32 %v1999_v42, %v1997_v32 }
 0x316   : >> { %v679_v44 = vpack.c.bf16 %v678_v43, %v678_v43 }
 0x318   : >> { %1820 = vmatmul.mubr.msk.bf16.vlgmr.msra.gmra.mrb[12].mxu0 %vm667_vm2, %v679_v44 }
 0x319   : >> { %1835 = vmatprep.mubr.msk.bf16.mxu0 %vm2057_vm1, %v2056_v2  ;;  %1832 = vmatpush3.bf16.msra.mxu0 %v1986_v46 }
 0x31a   : >> { %1833 = vmatprep.subr.bf16.mxu0 %v2056_v2 }
 0x31d   : >> { %1834 = vmatpush3.bf16.msra.mxu0 %v1987_v52 }
 0x3eb   : >> { %v722_v47 = vpop.f32.mrb[12].mxu0 }
 0x3ec   : >> { %v728_v48 = vpack.c.bf16 %v722_v47, %v722_v47  ;;  %v1821_v49 = vpop.f32.mrb[13].mxu0 }
 0x3ed   : >> { %v725_v50 = vpop.f32.mrb[14].mxu0 }
 0x3ee   : >> { %v1822_v51 = vpop.f32.mrb[15].mxu0  ;;  %1828 = vmatmul.mubr.msk.bf16.vlgmr.msra.gmra.mrb[4].mxu1 %vm434_vm0, %v728_v48 }
 0x3ef   : >> { %1855 = vmatprep.mubr.msk.bf16.mxu1 %vm2057_vm1, %v2056_v2  ;;  %1840 = vmatpush3.bf16.msra.mxu1 %v1988_v53 }
 0x3f0   : >> { %1841 = vmatprep.subr.bf16.mxu1 %v2056_v2 }
 0x3f3   : >> { %1842 = vmatpush3.bf16.msra.mxu1 %v1989_v54 }
 0x3f4   : >> { %1843 = vmatprep.subr.bf16.mxu1 %v2056_v2 }
 0x3f7   : >> { %1844 = vmatpush3.bf16.msra.mxu1 %v1990_v55 }
 0x3f8   : >> { %1845 = vmatprep.subr.bf16.mxu1 %v2056_v2 }
 0x3fb   : >> { %1846 = vmatpush3.bf16.msra.mxu1 %v1991_v56 }
 0x3fc   : >> { %1847 = vmatprep.subr.bf16.mxu1 %v2056_v2 }
 0x3ff   : >> { %1848 = vmatpush3.bf16.msra.mxu1 %v1992_v57 }
 0x400   : >> { %1849 = vmatprep.subr.bf16.mxu1 %v2056_v2 }
 0x403   : >> { %1850 = vmatpush3.bf16.msra.mxu1 %v1993_v58 }
 0x404   : >> { %1851 = vmatprep.subr.bf16.mxu1 %v2056_v2 }
 0x407   : >> { %1852 = vmatpush3.bf16.msra.mxu1 %v1994_v59 }
 0x408   : >> { %1853 = vmatprep.subr.bf16.mxu1 %v2056_v2  ;;  %v2058_v2 = vmov 0  }
 0x409   : >> { %1976 = vset.pattern.permute.xlu1 %v2058_v2  ;;  %1977 = vset.pattern.permute.xlu0 %v2058_v2  ;;  %v962_v6 = vsel %vm960_vm4, 1, %v2058_v2 }
 0x40a   : >> { %964 = vperm.xlu1 %1976, %v962_v6  }
 0x40b   : >> { %1854 = vmatpush3.bf16.msra.mxu1 %v1995_v3 }
 0x489   : >> { %v965_v18 = vpop.permute.xlu1 %964 }
 0x48a   : >> { %vm966_vm5 = vcmp.eq.s32.totalorder %v965_v18, 1 }
 0x4c1   : >> { %v782_v60 = vpop.f32.mrb[4].mxu1 }
 0x4c2   : >> { %v788_v61 = vadd.f32 %v782_v60, %v2181_v4  ;;  %v1829_v62 = vpop.f32.mrb[5].mxu1 }
 0x4c3   : >> { %v785_v63 = vpop.f32.mrb[6].mxu1 }
 0x4c4   : >> { %v789_v0 = vpack.c.bf16 %v788_v61, %v788_v61  ;;  %v1830_v1 = vpop.f32.mrb[7].mxu1 }
 0x4c6   : >> { %1836 = vmatmul.mubr.msk.bf16.vlgmr.msra.gmra.mrb[16].mxu0 %vm434_vm0, %v789_v0 }
 0x599   : >> { %v843_v7 = vpop.f32.mrb[16].mxu0 }
 0x59a   : >> { %v849_v8 = vmax.f32 %v843_v7, 0.0  ;;  %v1837_v9 = vpop.f32.mrb[17].mxu0 }
 0x59b   : >> { %v846_v10 = vpop.f32.mrb[18].mxu0 }
 0x59c   : >> { %v850_v11 = vpack.c.bf16 %v849_v8, %v849_v8  ;;  %v1838_v12 = vpop.f32.mrb[19].mxu0 }
 0x59e   : >> { %1856 = vmatmul.mubr.bf16.vlgmr.msra.gmra.mrb[8].mxu1 %v850_v11 }
 0x671   : >> { %v949_v13 = vpop.f32.mrb[8].mxu1 }
 0x672   : >> { %v955_v14 = vadd.f32 %v949_v13, %v788_v61  ;;  %v1857_v15 = vpop.f32.mrb[9].mxu1 }
 0x673   : >> { %v952_v16 = vpop.f32.mrb[10].mxu1 }
 0x674   : >> { %956 = vst.msk [vmem:[#allocation3] sm:$0xff] %vm434_vm0, %v955_v14  ;;  %v1858_v17 = vpop.f32.mrb[11].mxu1 }
 0x679   : > { %442 = sbr.rel (!%p439_p6) target bundleno = 21 (0x15), region = 110 }
 0x67b   : >> { %v957_v19 = vld [vmem:[#allocation3] sm:$0xff] }
 0x67c   : >> { %v958_v20 = vrot.slane %v957_v19, 7 }
 0x67e   : >> { %v967_v21 = vsel %vm966_vm5, %v958_v20, %v2181_v4 }
 0x67f   : >> { %968 = vst.msk [vmem:[#allocation2] sm:$0xff] %vm434_vm0, %v967_v21 }
 0x680 PF: > { %v2000_v22 = vld [vmem:[%s2425_s4] sm:$0xff]   ;;  %v2059_v23 = vmov 0.0   ;;  %v2001_v4 = vld [vmem:[%s2425_s4 + $0x8] sm:$0xff]   ;;  %vm2060_vm6 = vmmov 0   ;;  %vm1193_vm7 = vcmask 64512   ;;  %vm1210_vm8 = vcmask 1043456  }
 0x681   : > { %1859 = vmatprep.subr.bf16.mxu0 %v2059_v23  ;;  %1883 = vmatprep.subr.bf16.mxu1 %v2059_v23  ;;  %v2002_v25 = vld [vmem:[%s2426_s5] sm:$0xff]   ;;  %v2003_v27 = vld [vmem:[%s2426_s5 + $0x8] sm:$0xff]   ;;  %v2012_v12 = vld [vmem:[%s2430_s9 + $0x10] sm:$0xff]  }
 0x682   : > { %1860 = vmatpush3.bf16.msra.mxu0 %v2000_v22  ;;  %1863 = vmatprep.mubr.msk.bf16.mxu0 %vm2060_vm6, %v2059_v23  ;;  %v2004_v39 = vld [vmem:[%s2427_s6] sm:$0xff]   ;;  %v2005_v40 = vld [vmem:[%s2427_s6 + $0x8] sm:$0xff]   ;;  %v2013_v13 = vld [vmem:[%s2430_s9 + $0x18] sm:$0xff]  }
 0x683   : > { %1861 = vmatprep.subr.bf16.mxu0 %v2059_v23  ;;  %1885 = vmatprep.mubr.msk.bf16.mxu1 %vm2060_vm6, %v2059_v23  ;;  %v1191_v42 = vld [vmem:[%s2154_s29] sm:$0xff]  ;;  %v2007_v1 = vld [vmem:[%s2428_s7 + $0x8] sm:$0xff]   ;;  %v2016_v16 = vld [vmem:[%s2430_s9 + $0x30] sm:$0xff]  }
 0x684   : > { %v2006_v60 = vld [vmem:[%s2428_s7] sm:$0xff]   ;;  %v2009_v9 = vld [vmem:[%s2429_s8 + $0x8] sm:$0xff]  }
 0x685   : > { %v2008_v3 = vld [vmem:[%s2429_s8] sm:$0xff]   ;;  %v2011_v11 = vld [vmem:[%s2430_s9 + $0x8] sm:$0xff]  }
 0x686   : > { %v2299_v24 = vld [vmem:[#allocation2] sm:$0xff]  ;;  %1862 = vmatpush3.bf16.msra.mxu0 %v2001_v4  ;;  %v2015_v15 = vld [vmem:[%s2430_s9 + $0x28] sm:$0xff]   ;;  %v2017_v4 = vld [vmem:[%s2430_s9 + $0x38] sm:$0xff]  }
 0x687   : > { %v970_v26 = vpack.c.bf16 %v2299_v24, %v2299_v24  ;;  %1867 = vmatprep.subr.bf16.mxu0 %v2059_v23  ;;  %v2010_v10 = vld [vmem:[%s2430_s9] sm:$0xff]  }
 0x688   : > { %v2014_v14 = vld [vmem:[%s2430_s9 + $0x20] sm:$0xff]  }
 0x689   : > { %1864 = vmatmul.mubr.msk.bf16.vlgmr.msra.gmra.mrb[0].mxu0 %vm434_vm0, %v970_v26 }
 0x68a   : > { %1868 = vmatpush3.bf16.msra.mxu0 %v2002_v25  ;;  %1871 = vmatprep.mubr.msk.bf16.mxu0 %vm2060_vm6, %v2059_v23 }
 0x68b   : > { %1869 = vmatprep.subr.bf16.mxu0 %v2059_v23 }
 0x68e   : > { %1870 = vmatpush3.bf16.msra.mxu0 %v2003_v27 }
 0x68f   : > { %1875 = vmatprep.subr.bf16.mxu0 %v2059_v23 }
 0x691   : > { %1872 = vmatmul.mubr.msk.bf16.vlgmr.msra.gmra.mrb[4].mxu0 %vm434_vm0, %v970_v26 }
 0x692   : > { %1879 = vmatprep.mubr.msk.bf16.mxu0 %vm2060_vm6, %v2059_v23  ;;  %1876 = vmatpush3.bf16.msra.mxu0 %v2004_v39 }
 0x693   : > { %1877 = vmatprep.subr.bf16.mxu0 %v2059_v23 }
 0x696   : > { %1878 = vmatpush3.bf16.msra.mxu0 %v2005_v40 }
 0x697   : > { %1889 = vmatprep.subr.bf16.mxu0 %v2059_v23 }
 0x699   : > { %1880 = vmatmul.mubr.msk.bf16.vlgmr.msra.gmra.mrb[8].mxu0 %vm434_vm0, %v970_v26 }
 0x69a   : > { %1891 = vmatprep.mubr.msk.bf16.mxu0 %vm2060_vm6, %v2059_v23 }
 0x75c   : > { %v1024_v28 = vpop.f32.mrb[0].mxu0 }
 0x75d   : > { %v1865_v29 = vpop.f32.mrb[1].mxu0  ;;  %v1142_v38 = vpack.c.bf16 %v1024_v28, %v1024_v28 }
 0x75e   : > { %v1027_v30 = vpop.f32.mrb[2].mxu0 }
 0x75f   : > { %v1866_v31 = vpop.f32.mrb[3].mxu0  ;;  %v2018_v30 = vld [vmem:[%s2431_s10] sm:$0xff]  }
 0x760   : > { %v2019_v31 = vld [vmem:[%s2431_s10 + $0x8] sm:$0xff]  }
 0x764   : > { %v1080_v32 = vpop.f32.mrb[4].mxu0 }
 0x765   : > { %v1143_v33 = vpack.c.bf16 %v1080_v32, %v1080_v32  ;;  %v1873_v34 = vpop.f32.mrb[5].mxu0 }
 0x766   : > { %v1083_v35 = vpop.f32.mrb[6].mxu0 }
 0x767   : > { %v1874_v36 = vpop.f32.mrb[7].mxu0  ;;  %v1148_v37 = vsel %vm434_vm0, %v1143_v33, 0 }
 0x768   : > { %1884 = vmatpush3.bf16.xpose.msra.mxu1 %v1148_v37 }
 0x769   : > { %1895 = vmatprep.subr.bf16.mxu1 %v2059_v23 }
 0x76c   : > { %v1136_v54 = vpop.f32.mrb[8].mxu0 }
 0x76d   : > { %v1881_v55 = vpop.f32.mrb[9].mxu0  ;;  %v1206_v58 = vpack.c.bf16 %v1136_v54, %v1136_v54 }
 0x76e   : > { %v1139_v56 = vpop.f32.mrb[10].mxu0 }
 0x76f   : > { %1886 = vmatmul.mubr.msk.bf16.vlgmr.msra.gmra.mrb[0].mxu1 %vm434_vm0, %v1142_v38  ;;  %v1882_v57 = vpop.f32.mrb[11].mxu0  ;;  %v1212_v59 = vsel %vm1210_vm8, %v1206_v58, 0 }
 0x770   : > { %1899 = vmatprep.mubr.msk.bf16.mxu1 %vm2060_vm6, %v2059_v23  ;;  %1890 = vmatpush3.bf16.msra.mxu0 %v1212_v59 }
 0x771   : > { %1903 = vmatprep.subr.bf16.mxu0 %v2059_v23  ;;  %1896 = vmatpush3.bf16.msra.mxu1 %v2006_v60 }
 0x772   : > { %1897 = vmatprep.subr.bf16.mxu1 %v2059_v23 }
 0x775   : > { %1898 = vmatpush3.bf16.msra.mxu1 %v2007_v1 }
 0x776   : > { %1911 = vmatprep.subr.bf16.mxu1 %v2059_v23 }
 0x842   : > { %v1184_v41 = vpop.f32.mrb[0].mxu1 }
 0x843   : > { %v1190_v43 = vmul.f32 0.17677669, %v1184_v41  ;;  %v1887_v44 = vpop.f32.mrb[1].mxu1 }
 0x844   : > { %v1187_v45 = vpop.f32.mrb[2].mxu1 }
 0x845   : > { %v1888_v46 = vpop.f32.mrb[3].mxu1  ;;  %v1192_v47 = vadd.f32 %v1191_v42, %v1190_v43 }
 0x847   : > { %v1194_v48 = vsel %vm1193_vm7, %v1192_v47, -inf }
 0x848   : > { %1195 = vmax.xlane.f32.xlu0 %v1194_v48 }
 0x8d5   : > { %v1196_v49 = vpop.xlane.xlu0 %1195 }
 0x8d6   : > { %v1197_v50 = vsub.f32 %v1192_v47, %v1196_v49 }
 0x8d8   : > { %v1198_v51 = vmul.f32 1.442695, %v1197_v50 }
 0x8da   : > { %2020 = vpow2.f32 %v1198_v51 }
 0x8e4   : > { %v2021_v52 = vpop.eup %2020 }
 0x8e5   : > { %v1200_v53 = vsel %vm1193_vm7, %v2021_v52, 0.0 }
 0x8e6   : > { %1201 = vadd.xlane.f32.xlu0 %v1200_v53 }
 0x973   : > { %v1202_v61 = vpop.xlane.xlu0 %1201 }
 0x974   : > { %2022 = vrcp.f32 %v1202_v61 }
 0x97e   : > { %v2023_v62 = vpop.eup %2022 }
 0x97f   : > { %v1204_v63 = vmul.f32 %v2023_v62, %v2021_v52 }
 0x981   : > { %v1205_v0 = vpack.c.bf16 %v1204_v63, %v1204_v63 }
 0x983   : > { %1892 = vmatmul.mubr.msk.bf16.vlgmr.msra.gmra.mrb[12].mxu0 %vm1193_vm7, %v1205_v0 }
 0x984   : > { %1907 = vmatprep.mubr.msk.bf16.mxu0 %vm2060_vm6, %v2059_v23  ;;  %1904 = vmatpush3.bf16.msra.mxu0 %v2008_v3 }
 0x985   : > { %1905 = vmatprep.subr.bf16.mxu0 %v2059_v23 }
 0x988   : > { %1906 = vmatpush3.bf16.msra.mxu0 %v2009_v9 }
 0x989   : > { %1931 = vmatprep.subr.bf16.mxu0 %v2059_v23 }
 0xa56   : > { %v1248_v5 = vpop.f32.mrb[12].mxu0 }
 0xa57   : > { %v1254_v2 = vpack.c.bf16 %v1248_v5, %v1248_v5  ;;  %v1893_v6 = vpop.f32.mrb[13].mxu0 }
 0xa58   : > { %v1251_v7 = vpop.f32.mrb[14].mxu0 }
 0xa59   : > { %v1894_v8 = vpop.f32.mrb[15].mxu0  ;;  %1900 = vmatmul.mubr.msk.bf16.vlgmr.msra.gmra.mrb[4].mxu1 %vm434_vm0, %v1254_v2 }
 0xa5a   : > { %1927 = vmatprep.mubr.msk.bf16.mxu1 %vm2060_vm6, %v2059_v23  ;;  %1912 = vmatpush3.bf16.msra.mxu1 %v2010_v10 }
 0xa5b   : > { %1913 = vmatprep.subr.bf16.mxu1 %v2059_v23 }
 0xa5e   : > { %1914 = vmatpush3.bf16.msra.mxu1 %v2011_v11 }
 0xa5f   : > { %1915 = vmatprep.subr.bf16.mxu1 %v2059_v23 }
 0xa62   : > { %1916 = vmatpush3.bf16.msra.mxu1 %v2012_v12 }
 0xa63   : > { %1917 = vmatprep.subr.bf16.mxu1 %v2059_v23 }
 0xa66   : > { %1918 = vmatpush3.bf16.msra.mxu1 %v2013_v13 }
 0xa67   : > { %1919 = vmatprep.subr.bf16.mxu1 %v2059_v23 }
 0xa6a   : > { %1920 = vmatpush3.bf16.msra.mxu1 %v2014_v14 }
 0xa6b   : > { %1921 = vmatprep.subr.bf16.mxu1 %v2059_v23 }
 0xa6e   : > { %1922 = vmatpush3.bf16.msra.mxu1 %v2015_v15 }
 0xa6f   : > { %1923 = vmatprep.subr.bf16.mxu1 %v2059_v23 }
 0xa72   : > { %1924 = vmatpush3.bf16.msra.mxu1 %v2016_v16 }
 0xa73   : > { %1925 = vmatprep.subr.bf16.mxu1 %v2059_v23 }
 0xa76   : > { %1926 = vmatpush3.bf16.msra.mxu1 %v2017_v4 }
 0xb2c   : > { %v1308_v17 = vpop.f32.mrb[4].mxu1 }
 0xb2d   : > { %v1314_v18 = vadd.f32 %v1308_v17, %v2299_v24  ;;  %v1901_v19 = vpop.f32.mrb[5].mxu1 }
 0xb2e   : > { %v1311_v20 = vpop.f32.mrb[6].mxu1 }
 0xb2f   : > { %v1315_v21 = vpack.c.bf16 %v1314_v18, %v1314_v18  ;;  %v1902_v22 = vpop.f32.mrb[7].mxu1 }
 0xb31   : > { %1908 = vmatmul.mubr.msk.bf16.vlgmr.msra.gmra.mrb[16].mxu0 %vm434_vm0, %v1315_v21 }
 0xb32   : > { %1935 = vmatprep.mubr.msk.bf16.mxu0 %vm2060_vm6, %v2059_v23  ;;  %1932 = vmatpush3.bf16.msra.mxu0 %v2018_v30 }
 0xb33   : > { %1933 = vmatprep.subr.bf16.mxu0 %v2059_v23 }
 0xb36   : > { %1934 = vmatpush3.bf16.msra.mxu0 %v2019_v31 }
 0xc04   : > { %v1369_v25 = vpop.f32.mrb[16].mxu0 }
 0xc05   : > { %v1375_v26 = vmax.f32 %v1369_v25, 0.0  ;;  %v1909_v27 = vpop.f32.mrb[17].mxu0 }
 0xc06   : > { %v1372_v28 = vpop.f32.mrb[18].mxu0 }
 0xc07   : > { %v1376_v29 = vpack.c.bf16 %v1375_v26, %v1375_v26  ;;  %v1910_v24 = vpop.f32.mrb[19].mxu0 }
 0xc09   : > { %1928 = vmatmul.mubr.bf16.vlgmr.msra.gmra.mrb[8].mxu1 %v1376_v29 }
 0xcdc   : > { %v1475_v32 = vpop.f32.mrb[8].mxu1 }
 0xcdd   : > { %v1481_v33 = vadd.f32 %v1475_v32, %v1314_v18  ;;  %v1929_v34 = vpop.f32.mrb[9].mxu1 }
 0xcde   : > { %v1478_v35 = vpop.f32.mrb[10].mxu1 }
 0xcdf   : > { %1482 = vst.msk [vmem:[#allocation3] sm:$0xff] %vm434_vm0, %v1481_v33  ;;  %v1930_v36 = vpop.f32.mrb[11].mxu1 }
 0xce6   : > { %v1483_v37 = vld [vmem:[#allocation3] sm:$0xff] }
 0xce7   : > { %v1484_v38 = vpack.c.bf16 %v1483_v37, %v1483_v37 }
 0xce9   : > { %1936 = vmatmul.mubr.msk.bf16.vlgmr.msra.gmra.mrb[20].mxu0 %vm434_vm0, %v1484_v38 }
 0xdbc   : > { %v1539_v39 = vpop.f32.mrb[20].mxu0 }
 0xdbd   : > { %1545 = vst [vmem:[%s427_s16] sm:$0xff] %v1539_v39  ;;  %v1937_v40 = vpop.f32.mrb[21].mxu0 }
 0xdbe   : > { %v1542_v23 = vpop.f32.mrb[22].mxu0 }
 0xdbf   : > { %v1938_v41 = vpop.f32.mrb[23].mxu0 }
 0xdc0 PF: > { %s22_s21 = sadd.s32 1, %s2050_s21   ;;  %s2433_s19 = smov %s2046_s20 }
 0xdc1   : > { %p19_p7 = scmp.ge.s32.totalorder %s22_s21, 4   ;;  %s2434_s20 = smov %s2436_s0 }
 0xdc3   :  { %21 = sbr.rel (!%p19_p7) target bundleno = 2 (0x2), region = 121 }

</bundles_post_ra>
